<compile_context>
chip_gen: v7x
topology: tpu7x:2x2x1
jax: 0.10.0
libtpu: 0.0.40
codegen_flags: <defaults>
</compile_context>

<pallas_src>
import jax
import jax.numpy as jnp
from jax.experimental import pallas as pl
from jax.experimental.pallas import tpu as pltpu


def _round_up(n, m):
    return (n + m - 1) // m * m


# ----------------------------------------------------------------------------
# Shared conv epilogue.
#
# z : (3, S) per-tap products with the sequence on the LANE axis,
#     z[k, s] = w_k . x[s].
# Returns sigmoid(Conv1d(k=3, pad=1) + bias) as a lane-dense (1, S) row:
#     y[s] = z[0, s-1] + z[1, s] + z[2, s+1] + b   (zero padded at boundaries)
# The +/-1 lane shifts are done with small iota-built shift matrices on the
# MXU -- boundary zero-padding falls out of the all-zero first / last columns,
# so no masks are needed.
# ----------------------------------------------------------------------------
def _conv_gate(z, bias):
    s = z.shape[1]
    r = jax.lax.broadcasted_iota(jnp.int32, (s, s), 0)   # source position t
    c = jax.lax.broadcasted_iota(jnp.int32, (s, s), 1)   # output position s
    shift_prev = (r == c - 1).astype(jnp.float32)        # picks z0[s-1]; col 0 zero
    shift_next = (r == c + 1).astype(jnp.float32)        # picks z2[s+1]; last col zero
    y = (z[1:2, :]
         + jnp.dot(z[0:1, :], shift_prev, preferred_element_type=jnp.float32)
         + jnp.dot(z[2:3, :], shift_next, preferred_element_type=jnp.float32))
    return jax.nn.sigmoid(y + bias)


# ----------------------------------------------------------------------------
# Kernels
# ----------------------------------------------------------------------------
# lhs contracts dim 1, rhs contracts dim 1  ==  A @ B.T  (lane-dense result).
_NT_DIMS = (((1,), (1,)), ((), ()))


def _fc_kernel(b_ref, x_ref, wt_ref, o_ref):
    # b_ref: (1,1) f32 in SMEM; x_ref: (TILE, D); wt_ref: (1, D); o_ref: (1, TILE)
    y = jax.lax.dot_general(wt_ref[...], x_ref[...], _NT_DIMS,
                            preferred_element_type=jnp.float32)     # (1, TILE)
    o_ref[...] = jax.nn.sigmoid(y + b_ref[0, 0])


def _cnn_kernel(b_ref, x_ref, wt_ref, o_ref):
    # x_ref: (1, S, D); wt_ref: (3, D) stacked conv taps; o_ref: (1, 1, S)
    z = jax.lax.dot_general(wt_ref[...], x_ref[0], _NT_DIMS,
                            preferred_element_type=jnp.float32)     # (3, S)
    o_ref[0] = _conv_gate(z, b_ref[0, 0])


def _fused_kernel(bfc_ref, bcnn_ref, x_ref, wt_ref, ofc_ref, ocnn_ref):
    # One pass over x: wt row 0 is the FC weight, rows 1..3 the conv taps.
    z = jax.lax.dot_general(wt_ref[...], x_ref[0], _NT_DIMS,
                            preferred_element_type=jnp.float32)     # (4, S)
    ofc_ref[0] = jax.nn.sigmoid(z[0:1, :] + bfc_ref[0, 0])
    ocnn_ref[0] = _conv_gate(z[1:4, :], bcnn_ref[0, 0])


# ----------------------------------------------------------------------------
# Wrappers
# ----------------------------------------------------------------------------
def noise_gate_fc(x, w, b, *, block_rows=512):
    """gate_choose == 'FC': sigmoid(x @ w + b).  x:(B,S,D), w:(D,1), b:(1,1)."""
    B, S, D = x.shape
    N = B * S
    x2 = x.reshape(N, D)
    if N <= block_rows:
        tile, n_pad = N, N
    else:
        tile = _round_up(block_rows, 128)
        n_pad = _round_up(N, tile)
        x2 = jnp.pad(x2, ((0, n_pad - N), (0, 0)))
    wt = w.reshape(1, D)

    out = pl.pallas_call(
        _fc_kernel,
        out_shape=jax.ShapeDtypeStruct((1, n_pad), jnp.float32),
        grid=(n_pad // tile,),
        in_specs=[
            pl.BlockSpec(memory_space=pltpu.MemorySpace.SMEM),          # bias
            pl.BlockSpec((tile, D), lambda i: (i, 0)),                  # x rows
            pl.BlockSpec((1, D), lambda i: (0, 0)),                     # weight
        ],
        out_specs=pl.BlockSpec((1, tile), lambda i: (0, i)),            # lane-dense
        compiler_params=pltpu.CompilerParams(
            dimension_semantics=("parallel",)),
    )(b, x2, wt)
    return out[0, :N].reshape(B, S, 1)


def noise_gate_cnn(x, w3, b):
    """gate_choose == 'CNN': sigmoid(Conv1d(D->1, k=3, pad=1) over S + b).

    x:(B,S,D); w3:(3,D) with w3[k] = Conv1d.weight[0, :, k]; b:(1,1).
    """
    B, S, D = x.shape
    out = pl.pallas_call(
        _cnn_kernel,
        out_shape=jax.ShapeDtypeStruct((B, 1, S), jnp.float32),
        grid=(B,),
        in_specs=[
            pl.BlockSpec(memory_space=pltpu.MemorySpace.SMEM),          # bias
            pl.BlockSpec((1, S, D), lambda i: (i, 0, 0)),               # one batch
            pl.BlockSpec((3, D), lambda i: (0, 0)),                     # stacked taps
        ],
        out_specs=pl.BlockSpec((1, 1, S), lambda i: (i, 0, 0)),         # lane-dense
        compiler_params=pltpu.CompilerParams(
            dimension_semantics=("parallel",)),
    )(b, x, w3)
    return out.reshape(B, S, 1)


def noise_gate_fused(x, w_fc, b_fc, w3, b_cnn):
    """Both gates from a single pass over x (stacked (4, D) weight)."""
    B, S, D = x.shape
    wt = jnp.concatenate([w_fc.reshape(1, D), w3.reshape(3, D)], axis=0)  # (4, D)
    out_fc, out_cnn = pl.pallas_call(
        _fused_kernel,
        out_shape=(jax.ShapeDtypeStruct((B, 1, S), jnp.float32),
                   jax.ShapeDtypeStruct((B, 1, S), jnp.float32)),
        grid=(B,),
        in_specs=[
            pl.BlockSpec(memory_space=pltpu.MemorySpace.SMEM),
            pl.BlockSpec(memory_space=pltpu.MemorySpace.SMEM),
            pl.BlockSpec((1, S, D), lambda i: (i, 0, 0)),
            pl.BlockSpec((4, D), lambda i: (0, 0)),
        ],
        out_specs=(pl.BlockSpec((1, 1, S), lambda i: (i, 0, 0)),
                   pl.BlockSpec((1, 1, S), lambda i: (i, 0, 0))),
        compiler_params=pltpu.CompilerParams(
            dimension_semantics=("parallel",)),
    )(b_fc, b_cnn, x, wt)
    return out_fc.reshape(B, S, 1), out_cnn.reshape(B, S, 1)


# ----------------------------- pure-JAX refs ---------------------------------
def _fc_ref(x, w, b):
    return jax.nn.sigmoid(jnp.einsum("bsd,do->bso", x, w) + b.reshape(1, 1, 1))


def _cnn_ref(x, w3, b):
    xp = jnp.pad(x, ((0, 0), (1, 1), (0, 0)))
    y = (jnp.einsum("bsd,d->bs", xp[:, :-2], w3[0])
         + jnp.einsum("bsd,d->bs", xp[:, 1:-1], w3[1])
         + jnp.einsum("bsd,d->bs", xp[:, 2:], w3[2]))
    return jax.nn.sigmoid(y[..., None] + b.reshape(1, 1, 1))


if __name__ == "__main__":
    B, S, D = 2, 8, 32  # batch, seq_len, context_dim
    key = jax.random.PRNGKey(0)
    kx, kwf, kbf, kwc, kbc = jax.random.split(key, 5)

    x = jax.random.normal(kx, (B, S, D), dtype=jnp.float32)

    # FC parameters: xavier_uniform weight (Keras-style init from the module),
    # PyTorch-default uniform bias.
    fc_bound = (6.0 / (D + 1)) ** 0.5
    w_fc = jax.random.uniform(kwf, (D, 1), jnp.float32, -fc_bound, fc_bound)
    b_bound = 1.0 / (D ** 0.5)
    b_fc = jax.random.uniform(kbf, (1, 1), jnp.float32, -b_bound, b_bound)

    # CNN parameters: Conv1d(D, 1, kernel_size=3) default-style uniform init.
    # w_cnn[k, d] == Conv1d.weight[0, d, k].
    c_bound = 1.0 / ((D * 3) ** 0.5)
    w_cnn = jax.random.uniform(kwc, (3, D), jnp.float32, -c_bound, c_bound)
    b_cnn = jax.random.uniform(kbc, (1, 1), jnp.float32, -c_bound, c_bound)

    out_fc = jax.block_until_ready(noise_gate_fc(x, w_fc, b_fc))
    out_cnn = jax.block_until_ready(noise_gate_cnn(x, w_cnn, b_cnn))
    out_fc2, out_cnn2 = jax.block_until_ready(
        noise_gate_fused(x, w_fc, b_fc, w_cnn, b_cnn))

    ref_fc = _fc_ref(x, w_fc, b_fc)
    ref_cnn = _cnn_ref(x, w_cnn, b_cnn)

    assert out_fc.shape == (B, S, 1) and out_cnn.shape == (B, S, 1)
    assert jnp.allclose(out_fc, ref_fc, atol=1e-5)
    assert jnp.allclose(out_cnn, ref_cnn, atol=1e-5)
    assert jnp.allclose(out_fc2, ref_fc, atol=1e-5)
    assert jnp.allclose(out_cnn2, ref_cnn, atol=1e-5)

    print("KERNEL_OK")
</pallas_src>

<mosaic_0001>
module attributes {stable_mosaic.version = 11 : i64} {
  func.func @_fc_kernel(%arg0: i32, %arg1: memref<1x1xf32, #tpu.memory_space<smem>>, %arg2: memref<16x32xf32, #tpu.memory_space<vmem>>, %arg3: memref<1x32xf32, #tpu.memory_space<vmem>>, %arg4: memref<1x16xf32, #tpu.memory_space<vmem>>) attributes {dimension_semantics = [#tpu.dimension_semantics<parallel>], iteration_bounds = array<i64: 1>, scalar_prefetch = 0 : i64, scratch_operands = 0 : i64, tpu.core_type = #tpu.core_type<tc>, window_params = [{transform_indices = @transform_0, window_bounds = array<i64: 1, 1>}, {transform_indices = @transform_1, window_bounds = array<i64: 16, 32>}, {pipeline_mode = #tpu.pipeline_mode<synchronous>, transform_indices = @transform_2, window_bounds = array<i64: 1, 32>}, {transform_indices = @transform_3, window_bounds = array<i64: 1, 16>}]} {
    %c0 = arith.constant 0 : index
    %c0_0 = arith.constant 0 : index
    %0 = vector.load %arg3[%c0, %c0_0] : memref<1x32xf32, #tpu.memory_space<vmem>>, vector<1x32xf32>
    %c0_1 = arith.constant 0 : index
    %c0_2 = arith.constant 0 : index
    %1 = vector.load %arg2[%c0_1, %c0_2] : memref<16x32xf32, #tpu.memory_space<vmem>>, vector<16x32xf32>
    %cst = arith.constant dense<0.000000e+00> : vector<1x16xf32>
    %2 = tpu.matmul %0, %1, %cst {dimension_numbers = #tpu.dot_dimension_numbers<[1], [1], [0], [0], [0, 0, 1, 0], [], []>} : vector<1x32xf32>, vector<16x32xf32>, vector<1x16xf32> -> vector<1x16xf32>
    %c0_3 = arith.constant 0 : index
    %c0_4 = arith.constant 0 : index
    %3 = memref.load %arg1[%c0_3, %c0_4] : memref<1x1xf32, #tpu.memory_space<smem>>
    %4 = vector.broadcast %3 : f32 to vector<1x16xf32>
    %5 = arith.addf %2, %4 : vector<1x16xf32>
    %6 = arith.negf %5 : vector<1x16xf32>
    %7 = math.exp %6 : vector<1x16xf32>
    %cst_5 = arith.constant 1.000000e+00 : f32
    %8 = vector.broadcast %cst_5 : f32 to vector<1x16xf32>
    %9 = arith.addf %8, %7 : vector<1x16xf32>
    %10 = arith.divf %8, %9 : vector<1x16xf32>
    %c0_6 = arith.constant 0 : index
    %c0_7 = arith.constant 0 : index
    %11 = vector.load %arg4[%c0_6, %c0_7] : memref<1x16xf32, #tpu.memory_space<vmem>>, vector<1x16xf32>
    tpu.vector_store %arg4[%c0_6, %c0_7], %10 {strides = array<i32>} : memref<1x16xf32, #tpu.memory_space<vmem>>, vector<1x16xf32>,
    return
  }
  func.func @transform_0(%arg0: i32) -> (i32, i32) {
    %c0_i32 = arith.constant 0 : i32
    %c0_i32_0 = arith.constant 0 : i32
    %c0_i32_1 = arith.constant 0 : i32
    return %c0_i32, %c0_i32_0 : i32, i32
  }
  func.func @transform_1(%arg0: i32) -> (i32, i32) {
    %c0_i32 = arith.constant 0 : i32
    %c0_i32_0 = arith.constant 0 : i32
    return %arg0, %c0_i32 : i32, i32
  }
  func.func @transform_2(%arg0: i32) -> (i32, i32) {
    %c0_i32 = arith.constant 0 : i32
    %c0_i32_0 = arith.constant 0 : i32
    %c0_i32_1 = arith.constant 0 : i32
    return %c0_i32, %c0_i32_0 : i32, i32
  }
  func.func @transform_3(%arg0: i32) -> (i32, i32) {
    %c0_i32 = arith.constant 0 : i32
    %c0_i32_0 = arith.constant 0 : i32
    return %c0_i32, %arg0 : i32, i32
  }
}

</mosaic_0001>

<bundles_post_ra>
// kernel: tpu_custom_call.1
= control target key start
LH: loop header
LB: loop body
LE: loop exit
PB: predicated region body
PF: predicated region fallthrough
CT: control target
= control target key end

     0   :  { %9 = vsyncpa [#allocation4], 0  ;;  %s272_s0 = inlined_call_operand.<no memory space> [shape: f32[1,1], index: 0, kind: input, shape index: {}]   ;;  %s273_s1 = inlined_call_operand.hbm [shape: f32[16,32], index: 1, kind: input, shape index: {}]   ;;  %s274_s2 = inlined_call_operand.vmem [shape: f32[1,32], index: 2, kind: input, shape index: {}]   ;;  %s275_s3 = inlined_call_operand.hbm [shape: f32[1,16], index: 3, kind: output, shape index: {}]  }
   0x1   :  { %10 = vsyncpa [#allocation5], 0  ;;  %s215_s12 = smov [#allocation3]   ;;  %s167_s16 = scalar_lea.hbm %s273_s1, 256 }
   0x2   :  { %s18_s13 = sshll.u32 %s215_s12, 4  ;;  %p168_p0 = scmp.ne.s32.totalorder %s273_s1, %s167_s16  ;;  %s19_s13 = int_to_ptr.vmem [resolvable:$true] %s18_s13 }
   0x3   :  { %p171_p1 = scmp.lt.u32.totalorder %s167_s16, %s273_s1 }
   0x5   :  { %p173_p2 = pnand %p171_p1, %p168_p0 }
   0x7   :  { %176 = shalt.err (!%p173_p2)
}
   0x8   :  { %s177_s21 = scalar_lea.vmem %s19_s13, 256  ;;  %p182_p4 = scmp.lt.s32.totalorder %s19_s13, %s19_s13 }
   0x9   :  { %p178_p3 = scmp.ne.s32.totalorder %s19_s13, %s177_s21  ;;  %p183_p5 = scmp.lt.s32.totalorder %s177_s21, %s177_s21 }
   0xb   :  { %p184_p6 = por %p183_p5, %p182_p4 }
   0xd   :  { %p185_p7 = pnand %p184_p6, %p178_p3 }
   0xf   :  { %188 = shalt.err (!%p185_p7)
}
  0x10   :  { %s216_s22 = smov 128   ;;  %s217_s23 = smov 8  }
  0x11   :  { %24 = dma.hbm_to_vmem [thread:$0]  %s273_s1, 256, %s19_s13, [#allocation4], %s216_s22, %s216_s22, %s217_s23  }
  0x12   :  { %211 = dma.done.wait [#allocation4], 256  }
  0x13   :  { %212 = vsyncadd [#allocation4], 4294967040  ;;  %v218_v0 = vmov 0.0|0.0   ;;  %vm219_vm0 = vmmov 0   ;;  %v220_v1 = vmov 0.0   ;;  %vm35_vm1 = vcmask 261120  }
  0x14   :  { %152 = vmatprep.subr.bf16.mxu0 %v218_v0  ;;  %149 = vmatprep.mubr.msk.f32.mxu0 %vm219_vm0, %v220_v1  ;;  %v31_v2 = vld [vmem:[#allocation3] sm:$0xff]  ;;  %v32_v3 = vld [vmem:[#allocation3 + $0x8] sm:$0xff]  ;;  %vm154_vm2 = vmpackc.low %vm35_vm1, %vm35_vm1  ;;  %v34_v6 = vstv %s272_s0  ;;  %s221_s29 = smov [#allocation6]   ;;  %vm121_vm3 = vcmask 122880  }
  0x15   :  { %v153_v4 = vpack.c.bf16 %v32_v3, %v31_v2  ;;  %v30_v5 = vld [vmem:[%s274_s2] sm:$0x1]  ;;  %s129_s30 = sshll.u32 %s221_s29, 4  ;;  %s130_s30 = int_to_ptr.vmem [resolvable:$true] %s129_s30 }
  0x16   :  { %s189_s2 = scalar_lea.vmem %s130_s30, 16  ;;  %s193_s4 = scalar_lea.vmem %s130_s30, 32 }
  0x17   :  { %155 = vmatpush3.bf16.xpose.msk.msra.mxu0 %vm154_vm2, %v153_v4  ;;  %p190_p8 = scmp.ne.s32.totalorder %s130_s30, %s189_s2  ;;  %p194_p9 = scmp.lt.s32.totalorder %s130_s30, %s130_s30 }
  0x18   :  { %p195_p10 = scmp.lt.s32.totalorder %s193_s4, %s189_s2 }
  0x1a   :  { %p196_p11 = por %p195_p10, %p194_p9 }
  0x1c   :  { %p197_p12 = pnand %p196_p11, %p190_p8 }
  0x1e   :  { %150 = vmatmul.mubr.msk.f32.vlgmr.msra.gmra.mrb[0].mxu0 %vm35_vm1, %v30_v5 }
  0xf1   :  { %v111_v7 = vpop.f32.mrb[0].mxu0 }
  0xf2   :  { %v112_v8 = vadd.f32 %v111_v7, %v34_v6  ;;  %v151_v9 = vpop.f32.mrb[1].mxu0 }
  0xf4   :  { %v141_v10 = vmul.f32 -1.442695, %v112_v8 }
  0xf6   :  { %163 = vpow2.f32 %v141_v10 }
 0x100   :  { %v164_v11 = vpop.eup %163 }
 0x101   :  { %v118_v12 = vadd.f32 1.0, %v164_v11 }
 0x103   :  { %165 = vrcp.f32 %v118_v12 }
 0x10d   :  { %v166_v13 = vpop.eup %165 }
 0x10e   :  { %122 = vst.msk [vmem:[#allocation6] sm:$0x1] %vm121_vm3, %v166_v13 }
 0x10f   :  { %200 = shalt.err (!%p197_p12)
}
 0x110   :  { %s201_s6 = scalar_lea.hbm %s275_s3, 16 }
 0x111   :  { %p202_p13 = scmp.ne.s32.totalorder %s275_s3, %s201_s6  ;;  %p205_p0 = scmp.lt.u32.totalorder %s201_s6, %s275_s3 }
 0x113   :  { %p207_p1 = pnand %p205_p0, %p202_p13 }
 0x115   :  { %210 = shalt.err (!%p207_p1)
}
 0x116   :  { %132 = dma.vmem_to_hbm [thread:$0]  %s130_s30, 16, %s275_s3, [#allocation5]  }
 0x117   :  { %213 = dma.done.wait [#allocation5], 16  }
 0x118   :  { %214 = vsyncadd [#allocation5], 4294967280 }
 0x119   :  { %136 = vsyncpa [#allocation4], 1 }
 0x11a   :  { %137 = vsyncpa [#allocation5], 1 }

</bundles_post_ra>
